<compile_context>
chip_gen: v6e
topology: v6e:2x2x1
jax: 0.10.0
libtpu: 0.0.40
codegen_flags: <defaults>
</compile_context>

<pallas_src>
import functools

import jax
import jax.numpy as jnp
from jax.experimental import pallas as pl
from jax.experimental.pallas import tpu as pltpu

SIZE = 100  # PolarNet adaptive-pool output size used inside JointNetwork


def _round_up(n, m):
    return ((n + m - 1) // m) * m


def _prelu(y, alpha):
    # nn.PReLU() with a single learnable scalar (default init 0.25)
    return jnp.where(y > 0, y, alpha * y)


def _block_diag(a, b):
    (m1, n1), (m2, n2) = a.shape, b.shape
    top = jnp.concatenate([a, jnp.zeros((m1, n2), a.dtype)], axis=1)
    bot = jnp.concatenate([jnp.zeros((m2, n1), b.dtype), b], axis=1)
    return jnp.concatenate([top, bot], axis=0)


def joint_network_kernel(x_ref,
                         up1_ref, um1_ref, up2_ref, um2_ref,
                         w3_ref, a3_ref, w4_ref, a4_ref, w5_ref, a5_ref,
                         wj1_ref, wj2_ref, wj3_ref, wout_ref,
                         scal_ref,
                         o_ref):
    """One TILE of rows.  Activations are (feat, TILE): rows on the lane axis."""
    dt = w3_ref.dtype  # MXU compute dtype (bf16)

    def dense(w_ref, h, alpha):
        # bias-free Linear (+ PReLU) in transposed layout: y = W @ h, W = (out, in)
        y = jnp.dot(w_ref[...], h.astype(dt), preferred_element_type=jnp.float32)
        return _prelu(y, alpha)

    x = x_ref[...]                               # (2, T) lane-dense
    c1 = jnp.cos(x[0:1, :])                      # (1, T)
    c2 = jnp.cos(x[1:2, :])                      # (1, T)

    # fc1 (rank-1) + PReLU + fc2 fold:  y2 = c * (u_plus if c > 0 else u_minus)
    y2_1 = jnp.where(c1 > 0, up1_ref[...] * c1, um1_ref[...] * c1)   # (64, T)
    y2_2 = jnp.where(c2 > 0, up2_ref[...] * c2, um2_ref[...] * c2)   # (64, T)
    h1 = _prelu(y2_1, scal_ref[0])               # net1 fc2 output (64, T)
    h2 = _prelu(y2_2, scal_ref[1])               # net2 fc2 output (64, T)

    # Block-diagonal fused fc3/fc4/fc5 for both branches in one matmul each.
    h = jnp.concatenate([h1, h2], axis=0)        # (128, T)
    h = dense(w3_ref, h, a3_ref[...])            # (64, T)  rows 0..31 net1, 32..63 net2
    h = dense(w4_ref, h, a4_ref[...])            # (64, T)
    h = dense(w5_ref, h, a5_ref[...])            # (64, T)

    # Joint head: fc1 consumes the naturally-concatenated (64, T) directly.
    h = dense(wj1_ref, h, scal_ref[2])           # (32, T)
    h = dense(wj2_ref, h, scal_ref[3])           # (16, T)
    h = dense(wj3_ref, h, scal_ref[4])           # (8, T)

    # Final nn.Linear(8, 1) with bias: VPU multiply + sublane reduce (no tiny MXU op).
    o_ref[...] = (jnp.sum(wout_ref[...] * h, axis=0, keepdims=True) + scal_ref[5])


def init_params(key):
    """Deterministic synthetic parameters in torch layout (weight = (out, in))."""
    dims = {
        "net1": [(100, 2 * SIZE), (64, 100), (32, 64), (32, 32), (32, 32)],
        "net2": [(100, 2 * SIZE), (64, 100), (32, 64), (32, 32), (32, 32)],
        "joint": [(32, 64), (16, 32), (8, 16)],
    }
    n_w = sum(len(v) for v in dims.values())
    keys = list(jax.random.split(key, n_w + 2))
    params = {}
    ki = 0
    for net, layer_dims in dims.items():
        for li, (dout, din) in enumerate(layer_dims, start=1):
            params[f"{net}_w{li}"] = (
                jax.random.normal(keys[ki], (dout, din), jnp.float32) / jnp.sqrt(din))
            params[f"{net}_a{li}"] = jnp.asarray(0.25, jnp.float32)  # PReLU init
            ki += 1
    params["out_w"] = jax.random.normal(keys[ki], (1, 8), jnp.float32) / jnp.sqrt(8.0)
    params["out_b"] = jax.random.normal(keys[ki + 1], (1,), jnp.float32) * 0.1
    return params


def _prepare_kernel_weights(params, compute_dtype=jnp.bfloat16):
    """Torch-layout params -> kernel operands (fold fc1+fc2, block-diag fuse fc3..fc5)."""

    def fold_branch(prefix):
        w1 = params[f"{prefix}_w1"]                  # (100, 200)
        a1 = params[f"{prefix}_a1"]
        # ixs columns (first SIZE) are identically 0; xs columns are 100 copies
        # of cos(v)  =>  fc1 pre-activation == cos(v) * W1[:, SIZE:].sum(axis=1).
        w1_eff = w1[:, SIZE:].sum(axis=1)            # (100,)
        # PReLU of a rank-1 product is sign-separable in cos(v):
        w1_plus = jnp.where(w1_eff > 0, w1_eff, a1 * w1_eff)
        w1_minus = jnp.where(w1_eff < 0, w1_eff, a1 * w1_eff)
        w2 = params[f"{prefix}_w2"]                  # (64, 100)
        u_plus = (w2 @ w1_plus).reshape(64, 1).astype(jnp.float32)   # exact, f32
        u_minus = (w2 @ w1_minus).reshape(64, 1).astype(jnp.float32)
        return u_plus, u_minus

    up1, um1 = fold_branch("net1")
    up2, um2 = fold_branch("net2")

    def alpha_col(li):
        ones = jnp.ones((32, 1), jnp.float32)
        return jnp.concatenate(
            [ones * params[f"net1_a{li}"], ones * params[f"net2_a{li}"]], axis=0)

    w3_blk = _block_diag(params["net1_w3"], params["net2_w3"]).astype(compute_dtype)  # (64,128)
    w4_blk = _block_diag(params["net1_w4"], params["net2_w4"]).astype(compute_dtype)  # (64,64)
    w5_blk = _block_diag(params["net1_w5"], params["net2_w5"]).astype(compute_dtype)  # (64,64)

    weights = [
        up1, um1, up2, um2,                                     # (64,1) f32 each
        w3_blk, alpha_col(3),                                   # (64,128) bf16, (64,1) f32
        w4_blk, alpha_col(4),                                   # (64,64),  (64,1)
        w5_blk, alpha_col(5),                                   # (64,64),  (64,1)
        params["joint_w1"].astype(compute_dtype),               # (32, 64)
        params["joint_w2"].astype(compute_dtype),               # (16, 32)
        params["joint_w3"].astype(compute_dtype),               # (8, 16)
        params["out_w"].reshape(8, 1).astype(jnp.float32),      # (8, 1) column, VPU path
    ]
    scalars = jnp.stack(
        [params["net1_a2"], params["net2_a2"],
         params["joint_a1"], params["joint_a2"], params["joint_a3"],
         params["out_b"][0]]).astype(jnp.float32)               # (6,) SMEM
    return weights, scalars


@functools.partial(jax.jit, static_argnames=("tile",))
def joint_network_forward(x1, x2, params, *, tile=4096):
    """x1, x2: (B, 1) (or (B,)) float32.  Returns (B, 1) float32."""
    x1 = jnp.asarray(x1, jnp.float32).reshape(-1)
    x2 = jnp.asarray(x2, jnp.float32).reshape(-1)
    n = x1.shape[0]

    n_lane = _round_up(max(n, 1), 128)
    tile = _round_up(max(128, min(tile, n_lane)), 128)
    # Keep >=2 grid steps when possible so v7x's two TensorCores both get work.
    if n_lane > 128 and n_lane // tile < 2:
        tile = _round_up(n_lane // 2, 128)
    n_pad = _round_up(n_lane, tile)

    # Pack x1/x2 into one (2, n_pad) input -> a single input DMA per grid step.
    xp = jnp.stack([jnp.pad(x1, (0, n_pad - n)),
                    jnp.pad(x2, (0, n_pad - n))], axis=0)

    weights, scalars = _prepare_kernel_weights(params)

    x_spec = pl.BlockSpec((2, tile), lambda i: (0, i))
    weight_specs = [pl.BlockSpec(w.shape, lambda i: (0, 0)) for w in weights]
    smem_spec = pl.BlockSpec(memory_space=pltpu.MemorySpace.SMEM)

    macs_per_row = (2 * 64                                  # folded fc2 (VPU)
                    + 64 * 128 + 64 * 64 + 64 * 64          # fused fc3/fc4/fc5
                    + 32 * 64 + 16 * 32 + 8 * 16 + 8)       # joint head + out
    weight_bytes = sum(int(w.size) * w.dtype.itemsize for w in weights)

    out = pl.pallas_call(
        joint_network_kernel,
        out_shape=jax.ShapeDtypeStruct((1, n_pad), jnp.float32),
        grid=(n_pad // tile,),
        in_specs=[x_spec] + weight_specs + [smem_spec],
        out_specs=pl.BlockSpec((1, tile), lambda i: (0, i)),
        compiler_params=pltpu.CompilerParams(
            dimension_semantics=("parallel",),
            vmem_limit_bytes=32 * 1024 * 1024,
        ),
        cost_estimate=pl.CostEstimate(
            flops=2 * macs_per_row * n_pad,
            transcendentals=2 * n_pad,
            bytes_accessed=12 * n_pad + weight_bytes,
        ),
    )(xp, *weights, scalars)

    # Padded rows compute nonzero values (cos(0)=1 + bias); slice them off here.
    return out[0, :n].reshape(n, 1)


def joint_network_reference(x1, x2, params):
    """Pure-JAX f32 reference following the PyTorch forward literally."""

    def polar(v, prefix):
        n = v.shape[0]
        ixs = jnp.zeros((n, SIZE), jnp.float32)                      # indices/150000
        xs = jnp.broadcast_to(jnp.cos(v)[:, None], (n, SIZE))        # pooled values
        h = jnp.concatenate([ixs, xs], axis=-1)                      # (n, 200)
        for li in range(1, 6):
            h = _prelu(h @ params[f"{prefix}_w{li}"].T, params[f"{prefix}_a{li}"])
        return h                                                     # (n, 32)

    v1 = jnp.asarray(x1, jnp.float32).reshape(-1)
    v2 = jnp.asarray(x2, jnp.float32).reshape(-1)
    h = jnp.concatenate([polar(v1, "net1"), polar(v2, "net2")], axis=-1)
    for li in range(1, 4):
        h = _prelu(h @ params[f"joint_w{li}"].T, params[f"joint_a{li}"])
    return h @ params["out_w"].T + params["out_b"]                   # (n, 1)


if __name__ == "__main__":
    key = jax.random.PRNGKey(0)
    pkey, k1, k2 = jax.random.split(key, 3)
    params = init_params(pkey)

    # Each sample is a single value: L=1 is required by the joint Dense(64, 32).
    B = 8
    x1 = jax.random.normal(k1, (B, 1), jnp.float32)
    x2 = jax.random.normal(k2, (B, 1), jnp.float32)

    out = joint_network_forward(x1, x2, params)
    out = jax.block_until_ready(out)
    assert out.shape == (B, 1) and out.dtype == jnp.float32

    ref = joint_network_reference(x1, x2, params)
    max_err = float(jnp.max(jnp.abs(out - ref)))
    assert max_err < 5e-2, f"kernel/reference mismatch: max abs err = {max_err}"
    print("KERNEL_OK")
</pallas_src>

<mosaic_0001>
module attributes {stable_mosaic.version = 11 : i64} {
  func.func @joint_network_kernel(%arg0: i32, %arg1: memref<2x128xf32, #tpu.memory_space<vmem>>, %arg2: memref<64x1xf32, #tpu.memory_space<vmem>>, %arg3: memref<64x1xf32, #tpu.memory_space<vmem>>, %arg4: memref<64x1xf32, #tpu.memory_space<vmem>>, %arg5: memref<64x1xf32, #tpu.memory_space<vmem>>, %arg6: memref<64x128xbf16, #tpu.memory_space<vmem>>, %arg7: memref<64x1xf32, #tpu.memory_space<vmem>>, %arg8: memref<64x64xbf16, #tpu.memory_space<vmem>>, %arg9: memref<64x1xf32, #tpu.memory_space<vmem>>, %arg10: memref<64x64xbf16, #tpu.memory_space<vmem>>, %arg11: memref<64x1xf32, #tpu.memory_space<vmem>>, %arg12: memref<32x64xbf16, #tpu.memory_space<vmem>>, %arg13: memref<16x32xbf16, #tpu.memory_space<vmem>>, %arg14: memref<8x16xbf16, #tpu.memory_space<vmem>>, %arg15: memref<8x1xf32, #tpu.memory_space<vmem>>, %arg16: memref<6xf32, #tpu.memory_space<smem>>, %arg17: memref<1x128xf32, #tpu.memory_space<vmem>>) attributes {dimension_semantics = [#tpu.dimension_semantics<parallel>], iteration_bounds = array<i64: 1>, scalar_prefetch = 0 : i64, scratch_operands = 0 : i64, tpu.core_type = #tpu.core_type<tc>, window_params = [{transform_indices = @transform_0, window_bounds = array<i64: 2, 128>}, {pipeline_mode = #tpu.pipeline_mode<synchronous>, transform_indices = @transform_1, window_bounds = array<i64: 64, 1>}, {pipeline_mode = #tpu.pipeline_mode<synchronous>, transform_indices = @transform_2, window_bounds = array<i64: 64, 1>}, {pipeline_mode = #tpu.pipeline_mode<synchronous>, transform_indices = @transform_3, window_bounds = array<i64: 64, 1>}, {pipeline_mode = #tpu.pipeline_mode<synchronous>, transform_indices = @transform_4, window_bounds = array<i64: 64, 1>}, {pipeline_mode = #tpu.pipeline_mode<synchronous>, transform_indices = @transform_5, window_bounds = array<i64: 64, 128>}, {pipeline_mode = #tpu.pipeline_mode<synchronous>, transform_indices = @transform_6, window_bounds = array<i64: 64, 1>}, {pipeline_mode = #tpu.pipeline_mode<synchronous>, transform_indices = @transform_7, window_bounds = array<i64: 64, 64>}, {pipeline_mode = #tpu.pipeline_mode<synchronous>, transform_indices = @transform_8, window_bounds = array<i64: 64, 1>}, {pipeline_mode = #tpu.pipeline_mode<synchronous>, transform_indices = @transform_9, window_bounds = array<i64: 64, 64>}, {pipeline_mode = #tpu.pipeline_mode<synchronous>, transform_indices = @transform_10, window_bounds = array<i64: 64, 1>}, {pipeline_mode = #tpu.pipeline_mode<synchronous>, transform_indices = @transform_11, window_bounds = array<i64: 32, 64>}, {pipeline_mode = #tpu.pipeline_mode<synchronous>, transform_indices = @transform_12, window_bounds = array<i64: 16, 32>}, {pipeline_mode = #tpu.pipeline_mode<synchronous>, transform_indices = @transform_13, window_bounds = array<i64: 8, 16>}, {pipeline_mode = #tpu.pipeline_mode<synchronous>, transform_indices = @transform_14, window_bounds = array<i64: 8, 1>}, {transform_indices = @transform_15, window_bounds = array<i64: 6>}, {transform_indices = @transform_16, window_bounds = array<i64: 1, 128>}]} {
    %c0 = arith.constant 0 : index
    %c0_0 = arith.constant 0 : index
    %0 = vector.load %arg1[%c0, %c0_0] : memref<2x128xf32, #tpu.memory_space<vmem>>, vector<2x128xf32>
    %1 = vector.extract_strided_slice %0 {offsets = [0, 0], sizes = [1, 128], strides = [1, 1]} : vector<2x128xf32> to vector<1x128xf32>
    %2 = math.cos %1 : vector<1x128xf32>
    %3 = vector.extract_strided_slice %0 {offsets = [1, 0], sizes = [1, 128], strides = [1, 1]} : vector<2x128xf32> to vector<1x128xf32>
    %4 = math.cos %3 : vector<1x128xf32>
    %cst = arith.constant 0.000000e+00 : f32
    %5 = vector.broadcast %cst : f32 to vector<1x128xf32>
    %6 = arith.cmpf ogt, %2, %5 : vector<1x128xf32>
    %c0_1 = arith.constant 0 : index
    %c0_2 = arith.constant 0 : index
    %7 = vector.load %arg2[%c0_1, %c0_2] : memref<64x1xf32, #tpu.memory_space<vmem>>, vector<64x1xf32>
    %8 = vector.broadcast %7 : vector<64x1xf32> to vector<64x128xf32>
    %9 = vector.broadcast %2 : vector<1x128xf32> to vector<64x128xf32>
    %10 = arith.mulf %8, %9 : vector<64x128xf32>
    %c0_3 = arith.constant 0 : index
    %c0_4 = arith.constant 0 : index
    %11 = vector.load %arg3[%c0_3, %c0_4] : memref<64x1xf32, #tpu.memory_space<vmem>>, vector<64x1xf32>
    %12 = vector.broadcast %11 : vector<64x1xf32> to vector<64x128xf32>
    %13 = vector.broadcast %2 : vector<1x128xf32> to vector<64x128xf32>
    %14 = arith.mulf %12, %13 : vector<64x128xf32>
    %15 = vector.shape_cast %6 : vector<1x128xi1> to vector<1x128xi1>
    %16 = vector.broadcast %15 : vector<1x128xi1> to vector<64x128xi1>
    %17 = arith.select %16, %10, %14 : vector<64x128xi1>, vector<64x128xf32>
    %cst_5 = arith.constant 0.000000e+00 : f32
    %18 = vector.broadcast %cst_5 : f32 to vector<1x128xf32>
    %19 = arith.cmpf ogt, %4, %18 : vector<1x128xf32>
    %c0_6 = arith.constant 0 : index
    %c0_7 = arith.constant 0 : index
    %20 = vector.load %arg4[%c0_6, %c0_7] : memref<64x1xf32, #tpu.memory_space<vmem>>, vector<64x1xf32>
    %21 = vector.broadcast %20 : vector<64x1xf32> to vector<64x128xf32>
    %22 = vector.broadcast %4 : vector<1x128xf32> to vector<64x128xf32>
    %23 = arith.mulf %21, %22 : vector<64x128xf32>
    %c0_8 = arith.constant 0 : index
    %c0_9 = arith.constant 0 : index
    %24 = vector.load %arg5[%c0_8, %c0_9] : memref<64x1xf32, #tpu.memory_space<vmem>>, vector<64x1xf32>
    %25 = vector.broadcast %24 : vector<64x1xf32> to vector<64x128xf32>
    %26 = vector.broadcast %4 : vector<1x128xf32> to vector<64x128xf32>
    %27 = arith.mulf %25, %26 : vector<64x128xf32>
    %28 = vector.shape_cast %19 : vector<1x128xi1> to vector<1x128xi1>
    %29 = vector.broadcast %28 : vector<1x128xi1> to vector<64x128xi1>
    %30 = arith.select %29, %23, %27 : vector<64x128xi1>, vector<64x128xf32>
    %c0_10 = arith.constant 0 : index
    %31 = memref.load %arg16[%c0_10] : memref<6xf32, #tpu.memory_space<smem>>
    %cst_11 = arith.constant 0.000000e+00 : f32
    %32 = vector.broadcast %cst_11 : f32 to vector<64x128xf32>
    %33 = arith.cmpf ogt, %17, %32 : vector<64x128xf32>
    %34 = vector.broadcast %31 : f32 to vector<64x128xf32>
    %35 = arith.mulf %34, %17 : vector<64x128xf32>
    %36 = arith.select %33, %17, %35 : vector<64x128xi1>, vector<64x128xf32>
    %c1 = arith.constant 1 : index
    %37 = memref.load %arg16[%c1] : memref<6xf32, #tpu.memory_space<smem>>
    %cst_12 = arith.constant 0.000000e+00 : f32
    %38 = vector.broadcast %cst_12 : f32 to vector<64x128xf32>
    %39 = arith.cmpf ogt, %30, %38 : vector<64x128xf32>
    %40 = vector.broadcast %37 : f32 to vector<64x128xf32>
    %41 = arith.mulf %40, %30 : vector<64x128xf32>
    %42 = arith.select %39, %30, %41 : vector<64x128xi1>, vector<64x128xf32>
    %43 = tpu.concatenate %36, %42 in 0 : vector<64x128xf32>, vector<64x128xf32> -> vector<128x128xf32>
    %c0_13 = arith.constant 0 : index
    %c0_14 = arith.constant 0 : index
    %44 = vector.load %arg7[%c0_13, %c0_14] : memref<64x1xf32, #tpu.memory_space<vmem>>, vector<64x1xf32>
    %c0_15 = arith.constant 0 : index
    %c0_16 = arith.constant 0 : index
    %45 = vector.load %arg6[%c0_15, %c0_16] : memref<64x128xbf16, #tpu.memory_space<vmem>>, vector<64x128xbf16>
    %46 = arith.truncf %43 : vector<128x128xf32> to vector<128x128xbf16>
    %cst_17 = arith.constant dense<0.000000e+00> : vector<64x128xf32>
    %47 = tpu.matmul %45, %46, %cst_17 {dimension_numbers = #tpu.dot_dimension_numbers<[1], [0], [0], [1], [0, 0, 1, 1], [], []>} : vector<64x128xbf16>, vector<128x128xbf16>, vector<64x128xf32> -> vector<64x128xf32>
    %cst_18 = arith.constant 0.000000e+00 : f32
    %48 = vector.broadcast %cst_18 : f32 to vector<64x128xf32>
    %49 = arith.cmpf ogt, %47, %48 : vector<64x128xf32>
    %50 = vector.broadcast %44 : vector<64x1xf32> to vector<64x128xf32>
    %51 = arith.mulf %50, %47 : vector<64x128xf32>
    %52 = arith.select %49, %47, %51 : vector<64x128xi1>, vector<64x128xf32>
    %c0_19 = arith.constant 0 : index
    %c0_20 = arith.constant 0 : index
    %53 = vector.load %arg9[%c0_19, %c0_20] : memref<64x1xf32, #tpu.memory_space<vmem>>, vector<64x1xf32>
    %c0_21 = arith.constant 0 : index
    %c0_22 = arith.constant 0 : index
    %54 = vector.load %arg8[%c0_21, %c0_22] : memref<64x64xbf16, #tpu.memory_space<vmem>>, vector<64x64xbf16>
    %55 = arith.truncf %52 : vector<64x128xf32> to vector<64x128xbf16>
    %cst_23 = arith.constant dense<0.000000e+00> : vector<64x128xf32>
    %56 = tpu.matmul %54, %55, %cst_23 {dimension_numbers = #tpu.dot_dimension_numbers<[1], [0], [0], [1], [0, 0, 1, 1], [], []>} : vector<64x64xbf16>, vector<64x128xbf16>, vector<64x128xf32> -> vector<64x128xf32>
    %cst_24 = arith.constant 0.000000e+00 : f32
    %57 = vector.broadcast %cst_24 : f32 to vector<64x128xf32>
    %58 = arith.cmpf ogt, %56, %57 : vector<64x128xf32>
    %59 = vector.broadcast %53 : vector<64x1xf32> to vector<64x128xf32>
    %60 = arith.mulf %59, %56 : vector<64x128xf32>
    %61 = arith.select %58, %56, %60 : vector<64x128xi1>, vector<64x128xf32>
    %c0_25 = arith.constant 0 : index
    %c0_26 = arith.constant 0 : index
    %62 = vector.load %arg11[%c0_25, %c0_26] : memref<64x1xf32, #tpu.memory_space<vmem>>, vector<64x1xf32>
    %c0_27 = arith.constant 0 : index
    %c0_28 = arith.constant 0 : index
    %63 = vector.load %arg10[%c0_27, %c0_28] : memref<64x64xbf16, #tpu.memory_space<vmem>>, vector<64x64xbf16>
    %64 = arith.truncf %61 : vector<64x128xf32> to vector<64x128xbf16>
    %cst_29 = arith.constant dense<0.000000e+00> : vector<64x128xf32>
    %65 = tpu.matmul %63, %64, %cst_29 {dimension_numbers = #tpu.dot_dimension_numbers<[1], [0], [0], [1], [0, 0, 1, 1], [], []>} : vector<64x64xbf16>, vector<64x128xbf16>, vector<64x128xf32> -> vector<64x128xf32>
    %cst_30 = arith.constant 0.000000e+00 : f32
    %66 = vector.broadcast %cst_30 : f32 to vector<64x128xf32>
    %67 = arith.cmpf ogt, %65, %66 : vector<64x128xf32>
    %68 = vector.broadcast %62 : vector<64x1xf32> to vector<64x128xf32>
    %69 = arith.mulf %68, %65 : vector<64x128xf32>
    %70 = arith.select %67, %65, %69 : vector<64x128xi1>, vector<64x128xf32>
    %c2 = arith.constant 2 : index
    %71 = memref.load %arg16[%c2] : memref<6xf32, #tpu.memory_space<smem>>
    %c0_31 = arith.constant 0 : index
    %c0_32 = arith.constant 0 : index
    %72 = vector.load %arg12[%c0_31, %c0_32] : memref<32x64xbf16, #tpu.memory_space<vmem>>, vector<32x64xbf16>
    %73 = arith.truncf %70 : vector<64x128xf32> to vector<64x128xbf16>
    %cst_33 = arith.constant dense<0.000000e+00> : vector<32x128xf32>
    %74 = tpu.matmul %72, %73, %cst_33 {dimension_numbers = #tpu.dot_dimension_numbers<[1], [0], [0], [1], [0, 0, 1, 1], [], []>} : vector<32x64xbf16>, vector<64x128xbf16>, vector<32x128xf32> -> vector<32x128xf32>
    %cst_34 = arith.constant 0.000000e+00 : f32
    %75 = vector.broadcast %cst_34 : f32 to vector<32x128xf32>
    %76 = arith.cmpf ogt, %74, %75 : vector<32x128xf32>
    %77 = vector.broadcast %71 : f32 to vector<32x128xf32>
    %78 = arith.mulf %77, %74 : vector<32x128xf32>
    %79 = arith.select %76, %74, %78 : vector<32x128xi1>, vector<32x128xf32>
    %c3 = arith.constant 3 : index
    %80 = memref.load %arg16[%c3] : memref<6xf32, #tpu.memory_space<smem>>
    %c0_35 = arith.constant 0 : index
    %c0_36 = arith.constant 0 : index
    %81 = vector.load %arg13[%c0_35, %c0_36] : memref<16x32xbf16, #tpu.memory_space<vmem>>, vector<16x32xbf16>
    %82 = arith.truncf %79 : vector<32x128xf32> to vector<32x128xbf16>
    %cst_37 = arith.constant dense<0.000000e+00> : vector<16x128xf32>
    %83 = tpu.matmul %81, %82, %cst_37 {dimension_numbers = #tpu.dot_dimension_numbers<[1], [0], [0], [1], [0, 0, 1, 1], [], []>} : vector<16x32xbf16>, vector<32x128xbf16>, vector<16x128xf32> -> vector<16x128xf32>
    %cst_38 = arith.constant 0.000000e+00 : f32
    %84 = vector.broadcast %cst_38 : f32 to vector<16x128xf32>
    %85 = arith.cmpf ogt, %83, %84 : vector<16x128xf32>
    %86 = vector.broadcast %80 : f32 to vector<16x128xf32>
    %87 = arith.mulf %86, %83 : vector<16x128xf32>
    %88 = arith.select %85, %83, %87 : vector<16x128xi1>, vector<16x128xf32>
    %c4 = arith.constant 4 : index
    %89 = memref.load %arg16[%c4] : memref<6xf32, #tpu.memory_space<smem>>
    %c0_39 = arith.constant 0 : index
    %c0_40 = arith.constant 0 : index
    %90 = vector.load %arg14[%c0_39, %c0_40] : memref<8x16xbf16, #tpu.memory_space<vmem>>, vector<8x16xbf16>
    %91 = arith.truncf %88 : vector<16x128xf32> to vector<16x128xbf16>
    %cst_41 = arith.constant dense<0.000000e+00> : vector<8x128xf32>
    %92 = tpu.matmul %90, %91, %cst_41 {dimension_numbers = #tpu.dot_dimension_numbers<[1], [0], [0], [1], [0, 0, 1, 1], [], []>} : vector<8x16xbf16>, vector<16x128xbf16>, vector<8x128xf32> -> vector<8x128xf32>
    %cst_42 = arith.constant 0.000000e+00 : f32
    %93 = vector.broadcast %cst_42 : f32 to vector<8x128xf32>
    %94 = arith.cmpf ogt, %92, %93 : vector<8x128xf32>
    %95 = vector.broadcast %89 : f32 to vector<8x128xf32>
    %96 = arith.mulf %95, %92 : vector<8x128xf32>
    %97 = arith.select %94, %92, %96 : vector<8x128xi1>, vector<8x128xf32>
    %c0_43 = arith.constant 0 : index
    %c0_44 = arith.constant 0 : index
    %98 = vector.load %arg15[%c0_43, %c0_44] : memref<8x1xf32, #tpu.memory_space<vmem>>, vector<8x1xf32>
    %99 = vector.broadcast %98 : vector<8x1xf32> to vector<8x128xf32>
    %100 = arith.mulf %99, %97 : vector<8x128xf32>
    %cst_45 = arith.constant dense<0.000000e+00> : vector<128xf32>
    %101 = vector.multi_reduction <add>, %100, %cst_45 [0] : vector<8x128xf32> to vector<128xf32>
    %102 = vector.shape_cast %101 : vector<128xf32> to vector<1x128xf32>
    %c5 = arith.constant 5 : index
    %103 = memref.load %arg16[%c5] : memref<6xf32, #tpu.memory_space<smem>>
    %104 = vector.broadcast %103 : f32 to vector<1x128xf32>
    %105 = arith.addf %102, %104 : vector<1x128xf32>
    %c0_46 = arith.constant 0 : index
    %c0_47 = arith.constant 0 : index
    %106 = vector.load %arg17[%c0_46, %c0_47] : memref<1x128xf32, #tpu.memory_space<vmem>>, vector<1x128xf32>
    tpu.vector_store %arg17[%c0_46, %c0_47], %105 {strides = array<i32>} : memref<1x128xf32, #tpu.memory_space<vmem>>, vector<1x128xf32>,
    return
  }
  func.func @transform_0(%arg0: i32) -> (i32, i32) {
    %c0_i32 = arith.constant 0 : i32
    %c0_i32_0 = arith.constant 0 : i32
    return %c0_i32, %arg0 : i32, i32
  }
  func.func @transform_1(%arg0: i32) -> (i32, i32) {
    %c0_i32 = arith.constant 0 : i32
    %c0_i32_0 = arith.constant 0 : i32
    %c0_i32_1 = arith.constant 0 : i32
    return %c0_i32, %c0_i32_0 : i32, i32
  }
  func.func @transform_2(%arg0: i32) -> (i32, i32) {
    %c0_i32 = arith.constant 0 : i32
    %c0_i32_0 = arith.constant 0 : i32
    %c0_i32_1 = arith.constant 0 : i32
    return %c0_i32, %c0_i32_0 : i32, i32
  }
  func.func @transform_3(%arg0: i32) -> (i32, i32) {
    %c0_i32 = arith.constant 0 : i32
    %c0_i32_0 = arith.constant 0 : i32
    %c0_i32_1 = arith.constant 0 : i32
    return %c0_i32, %c0_i32_0 : i32, i32
  }
  func.func @transform_4(%arg0: i32) -> (i32, i32) {
    %c0_i32 = arith.constant 0 : i32
    %c0_i32_0 = arith.constant 0 : i32
    %c0_i32_1 = arith.constant 0 : i32
    return %c0_i32, %c0_i32_0 : i32, i32
  }
  func.func @transform_5(%arg0: i32) -> (i32, i32) {
    %c0_i32 = arith.constant 0 : i32
    %c0_i32_0 = arith.constant 0 : i32
    %c0_i32_1 = arith.constant 0 : i32
    return %c0_i32, %c0_i32_0 : i32, i32
  }
  func.func @transform_6(%arg0: i32) -> (i32, i32) {
    %c0_i32 = arith.constant 0 : i32
    %c0_i32_0 = arith.constant 0 : i32
    %c0_i32_1 = arith.constant 0 : i32
    return %c0_i32, %c0_i32_0 : i32, i32
  }
  func.func @transform_7(%arg0: i32) -> (i32, i32) {
    %c0_i32 = arith.constant 0 : i32
    %c0_i32_0 = arith.constant 0 : i32
    %c0_i32_1 = arith.constant 0 : i32
    return %c0_i32, %c0_i32_0 : i32, i32
  }
  func.func @transform_8(%arg0: i32) -> (i32, i32) {
    %c0_i32 = arith.constant 0 : i32
    %c0_i32_0 = arith.constant 0 : i32
    %c0_i32_1 = arith.constant 0 : i32
    return %c0_i32, %c0_i32_0 : i32, i32
  }
  func.func @transform_9(%arg0: i32) -> (i32, i32) {
    %c0_i32 = arith.constant 0 : i32
    %c0_i32_0 = arith.constant 0 : i32
    %c0_i32_1 = arith.constant 0 : i32
    return %c0_i32, %c0_i32_0 : i32, i32
  }
  func.func @transform_10(%arg0: i32) -> (i32, i32) {
    %c0_i32 = arith.constant 0 : i32
    %c0_i32_0 = arith.constant 0 : i32
    %c0_i32_1 = arith.constant 0 : i32
    return %c0_i32, %c0_i32_0 : i32, i32
  }
  func.func @transform_11(%arg0: i32) -> (i32, i32) {
    %c0_i32 = arith.constant 0 : i32
    %c0_i32_0 = arith.constant 0 : i32
    %c0_i32_1 = arith.constant 0 : i32
    return %c0_i32, %c0_i32_0 : i32, i32
  }
  func.func @transform_12(%arg0: i32) -> (i32, i32) {
    %c0_i32 = arith.constant 0 : i32
    %c0_i32_0 = arith.constant 0 : i32
    %c0_i32_1 = arith.constant 0 : i32
    return %c0_i32, %c0_i32_0 : i32, i32
  }
  func.func @transform_13(%arg0: i32) -> (i32, i32) {
    %c0_i32 = arith.constant 0 : i32
    %c0_i32_0 = arith.constant 0 : i32
    %c0_i32_1 = arith.constant 0 : i32
    return %c0_i32, %c0_i32_0 : i32, i32
  }
  func.func @transform_14(%arg0: i32) -> (i32, i32) {
    %c0_i32 = arith.constant 0 : i32
    %c0_i32_0 = arith.constant 0 : i32
    %c0_i32_1 = arith.constant 0 : i32
    return %c0_i32, %c0_i32_0 : i32, i32
  }
  func.func @transform_15(%arg0: i32) -> i32 {
    %c0_i32 = arith.constant 0 : i32
    %c0_i32_0 = arith.constant 0 : i32
    return %c0_i32 : i32
  }
  func.func @transform_16(%arg0: i32) -> (i32, i32) {
    %c0_i32 = arith.constant 0 : i32
    %c0_i32_0 = arith.constant 0 : i32
    return %c0_i32, %arg0 : i32, i32
  }
}

</mosaic_0001>

<bundles_post_ra>
// kernel: mul.22
= control target key start
LH: loop header
LB: loop body
LE: loop exit
PB: predicated region body
PF: predicated region fallthrough
CT: control target
= control target key end

     0   :  { %s20_s0 = inlined_call_operand.<no memory space> [shape: f32[], index: 0, kind: input, shape index: {}]   ;;  %s21_s1 = inlined_call_operand.vmem [shape: f32[32], index: 1, kind: output, shape index: {}]  }
   0x1   :  { %v2_v0 = vstv %s20_s0 }
   0x2   :  { %3 = vst [vmem:[%s21_s1] sm:$0x1] %v2_v0 }

// kernel: joint_network_forward.1
= control target key start
LH: loop header
LB: loop body
LE: loop exit
PB: predicated region body
PF: predicated region fallthrough
CT: control target
= control target key end

     0   :  { %s1935_s0 = inlined_call_operand.vmem [shape: f32[2,128], index: 0, kind: input, shape index: {}]   ;;  %s1936_s1 = inlined_call_operand.vmem [shape: f32[64,1], index: 1, kind: input, shape index: {}]   ;;  %s1937_s2 = inlined_call_operand.vmem [shape: f32[64,1], index: 2, kind: input, shape index: {}]   ;;  %s1938_s3 = inlined_call_operand.vmem [shape: f32[64,1], index: 3, kind: input, shape index: {}]   ;;  %s1939_s4 = inlined_call_operand.vmem [shape: f32[64,1], index: 4, kind: input, shape index: {}]   ;;  %s1940_s5 = inlined_call_operand.vmem [shape: bf16[64,128], index: 5, kind: input, shape index: {}]   ;;  %s1941_s6 = inlined_call_operand.vmem [shape: f32[64,1], index: 6, kind: input, shape index: {}]   ;;  %s1942_s7 = inlined_call_operand.vmem [shape: bf16[64,64], index: 7, kind: input, shape index: {}]   ;;  %s1943_s8 = inlined_call_operand.vmem [shape: f32[64,1], index: 8, kind: input, shape index: {}]   ;;  %s1944_s9 = inlined_call_operand.vmem [shape: bf16[64,64], index: 9, kind: input, shape index: {}]   ;;  %s1945_s10 = inlined_call_operand.vmem [shape: f32[64,1], index: 10, kind: input, shape index: {}]   ;;  %s1946_s11 = inlined_call_operand.vmem [shape: bf16[32,64], index: 11, kind: input, shape index: {}]   ;;  %s1947_s12 = inlined_call_operand.vmem [shape: bf16[16,32], index: 12, kind: input, shape index: {}]   ;;  %s1948_s13 = inlined_call_operand.vmem [shape: bf16[8,16], index: 13, kind: input, shape index: {}]   ;;  %s1949_s14 = inlined_call_operand.vmem [shape: f32[8,1], index: 14, kind: input, shape index: {}]   ;;  %s1950_s15 = inlined_call_operand.vmem [shape: f32[6], index: 15, kind: input, shape index: {}]   ;;  %s1951_s16 = inlined_call_operand.vmem [shape: f32[1,128], index: 16, kind: output, shape index: {}]  }
   0x1   :  { %1952 = sst [smem:[#allocation5_spill]] %s1935_s0 }
   0x2   :  { %21 = vsyncpa [#allocation3], 0  ;;  %s58_s23 = sshll.u32 %s1950_s15, 4  ;;  %s59_s23 = int_to_ptr.vmem [resolvable:$true] %s58_s23 }
   0x3   :  { %s1437_s24 = scalar_lea.vmem %s59_s23, 16  ;;  %p1442_p1 = scmp.lt.s32.totalorder %s59_s23, %s59_s23 }
   0x4   :  { %p1438_p0 = scmp.ne.s32.totalorder %s59_s23, %s1437_s24  ;;  %p1443_p2 = scmp.lt.s32.totalorder %s1437_s24, %s1437_s24 }
   0x6   :  { %p1444_p3 = por %p1443_p2, %p1442_p1 }
   0x8   :  { %p1445_p4 = pnand %p1444_p3, %p1438_p0 }
   0xa   :  { %1448 = shalt.err (!%p1445_p4)
}
   0xb   :  { %s1451_s25 = smov [#allocation2]  }
   0xc   :  { %61 = dma.vmem_to_smem %s59_s23, 16, %s1451_s25, [#allocation3]  }
   0xd   :  { %1449 = dma.done.wait [#allocation3], 16  }
   0xe   :  { %1450 = vsyncadd [#allocation3], 4294967280 }
   0xf   :  { %65 = sfence }
  0x10   :  { %s1953_s28 = sld [smem:[#allocation5_spill]]  ;;  %v368_v1 = vld [vmem:[%s1939_s4 + $0x30] sm:$0xff]  ;;  %v1452_v2 = vmov 0   ;;  %v369_v6 = vld [vmem:[%s1939_s4 + $0x38] sm:$0xff]  ;;  %v307_v11 = vld [vmem:[%s1938_s3 + $0x28] sm:$0xff] }
  0x11   :  { %1417 = vset.pattern.permute.xlu1 %v1452_v2  ;;  %1416 = vset.pattern.permute.xlu0 %v1452_v2  ;;  %v308_v4 = vld [vmem:[%s1938_s3 + $0x30] sm:$0xff]  ;;  %v309_v9 = vld [vmem:[%s1938_s3 + $0x38] sm:$0xff]  ;;  %v306_v13 = vld [vmem:[%s1938_s3 + $0x20] sm:$0xff]  ;;  %v1453_v21 = vmov 683565275   ;;  %s1275_s0 = sld [smem:[#allocation2 + $0x3]] }
  0x12   :  { %402 = vperm.xlu1 %1417, %v368_v1   ;;  %342 = vperm.xlu0 %1416, %v308_v4   ;;  %v367_v16 = vld [vmem:[%s1939_s4 + $0x28] sm:$0xff]  ;;  %v366_v19 = vld [vmem:[%s1939_s4 + $0x20] sm:$0xff]  ;;  %v1454_v23 = vmov 2475754826   ;;  %v1455_v25 = vmov 2131351028  }
  0x13   :  { %v1456_v27 = vmov 2102212464   ;;  %v1457_v29 = vmov 920167782   ;;  %v305_v35 = vld [vmem:[%s1938_s3 + $0x18] sm:$0xff]  ;;  %v304_v40 = vld [vmem:[%s1938_s3 + $0x10] sm:$0xff] }
  0x14   :  { %v1458_v37 = vmov 1326507024   ;;  %v365_v50 = vld [vmem:[%s1939_s4 + $0x18] sm:$0xff]  ;;  %v364_v54 = vld [vmem:[%s1939_s4 + $0x10] sm:$0xff]  ;;  %v303_v60 = vld [vmem:[%s1938_s3 + $0x8] sm:$0xff]  ;;  %s1280_s18 = sld [smem:[#allocation2 + $0x5]] }
  0x15   :  { %v363_v4 = vld [vmem:[%s1939_s4 + $0x8] sm:$0xff] }
  0x16   :  { %v1552_v0 = vld [vmem:[%s1953_s28] sm:$0x3]  ;;  %407 = vperm.xlu1 %1417, %v369_v6   ;;  %347 = vperm.xlu0 %1416, %v309_v9  }
  0x17   :  { %v71_v3 = vand.u32 2139095040, %v1552_v0  ;;  %v68_v7 = vand.u32 2147483647, %v1552_v0  ;;  %vm70_vm7 = vcmp.lt.s32.totalorder %v1552_v0, 0  ;;  %vm160_vm12 = vweird.f32 %v1552_v0 }
  0x19   :  { %v72_v5 = vshrl.u32 %v71_v3, 23  ;;  %v75_v12 = vand.u32 8388607, %v68_v7  ;;  %v302_v3 = vld [vmem:[%s1938_s3] sm:$0xff]  ;;  %vm1705_vm8 = vcmp.le.f32.partialorder %v68_v7, 0.7853982 }
  0x1a   :  { %337 = vperm.xlu1 %1417, %v307_v11   ;;  %332 = vperm.xlu0 %1416, %v306_v13   ;;  %v179_v11 = vld [vmem:[%s1936_s1 + $0x38] sm:$0xff]  ;;  %v178_v13 = vld [vmem:[%s1936_s1 + $0x30] sm:$0xff]  ;;  %v665_v7 = vld [vmem:[%s1943_s8 + $0x28] sm:$0xff] }
  0x1b   :  { %v1245_v8 = vadd.s32 4294967169, %v72_v5  ;;  %v76_v17 = vor.u32 8388608, %v75_v12 }
  0x1d   :  { %v78_v10 = vadd.s32 1, %v1245_v8  ;;  %v116_v39 = vshll.u32 %v76_v17, 8  ;;  %v362_v8 = vld [vmem:[%s1939_s4] sm:$0xff]  ;;  %v238_v17 = vld [vmem:[%s1937_s2 + $0x30] sm:$0xff] }
  0x1e   :  { %397 = vperm.xlu1 %1417, %v367_v16   ;;  %392 = vperm.xlu0 %1416, %v366_v19   ;;  %v177_v19 = vld [vmem:[%s1936_s1 + $0x28] sm:$0xff] }
  0x1f   :  { %vm79_vm0 = vcmp.gt.s32.totalorder %v78_v10, 0 }
  0x20   :  { %v80_v14 = vsel %vm79_vm0, %v78_v10, 0 }
  0x21   :  { %v82_v15 = vand.u32 31, %v80_v14  ;;  %v81_v18 = vshrl.u32 %v80_v14, 5 }
  0x22   :  { %327 = vperm.xlu1 %1417, %v305_v35   ;;  %322 = vperm.xlu0 %1416, %v304_v40  }
  0x23   :  { %v83_v20 = vsub.s32 32, %v82_v15  ;;  %v85_v22 = vshll.u32 %v1453_v21, %v82_v15  ;;  %v88_v24 = vshll.u32 %v1454_v23, %v82_v15  ;;  %v91_v26 = vshll.u32 %v1455_v25, %v82_v15 }
  0x24   :  { %v94_v28 = vshll.u32 %v1456_v27, %v82_v15  ;;  %v97_v30 = vshll.u32 %v1457_v29, %v82_v15  ;;  %vm100_vm1 = vcmp.lt.s32.totalorder %v81_v18, 1  ;;  %vm103_vm2 = vcmp.lt.s32.totalorder %v81_v18, 4  ;;  %v239_v15 = vld [vmem:[%s1937_s2 + $0x38] sm:$0xff] }
  0x25   :  { %v84_v31 = vshrl.u32 %v1453_v21, %v83_v20  ;;  %v86_v32 = vshrl.u32 %v1454_v23, %v83_v20  ;;  %v89_v33 = vshrl.u32 %v1455_v25, %v83_v20  ;;  %v92_v34 = vshrl.u32 %v1456_v27, %v83_v20  ;;  %v176_v21 = vld [vmem:[%s1936_s1 + $0x20] sm:$0xff]  ;;  %v237_v23 = vld [vmem:[%s1937_s2 + $0x28] sm:$0xff]  ;;  %v175_v27 = vld [vmem:[%s1936_s1 + $0x18] sm:$0xff] }
  0x26   :  { %v95_v36 = vshrl.u32 %v1457_v29, %v83_v20  ;;  %v98_v38 = vshrl.u32 %v1458_v37, %v83_v20  ;;  %vm101_vm3 = vcmp.lt.s32.totalorder %v81_v18, 2  ;;  %vm102_vm4 = vcmp.lt.s32.totalorder %v81_v18, 3  ;;  %387 = vperm.xlu1 %1417, %v365_v50   ;;  %382 = vperm.xlu0 %1416, %v364_v54   ;;  %v236_v25 = vld [vmem:[%s1937_s2 + $0x20] sm:$0xff]  ;;  %v485_v54 = vld [vmem:[%s1941_s6 + $0x10] sm:$0xff] }
  0x27   :  { %v87_v41 = vor.u32 %v86_v32, %v85_v22  ;;  %v90_v42 = vor.u32 %v89_v33, %v88_v24  ;;  %v93_v43 = vor.u32 %v92_v34, %v91_v26  ;;  %v234_v32 = vld [vmem:[%s1937_s2 + $0x10] sm:$0xff]  ;;  %v173_v33 = vld [vmem:[%s1936_s1 + $0x8] sm:$0xff]  ;;  %v172_v37 = vld [vmem:[%s1936_s1] sm:$0xff] }
  0x28   :  { %v96_v44 = vor.u32 %v95_v36, %v94_v28  ;;  %v99_v45 = vor.u32 %v98_v38, %v97_v30  ;;  %v174_v28 = vld [vmem:[%s1936_s1 + $0x10] sm:$0xff]  ;;  %v235_v30 = vld [vmem:[%s1937_s2 + $0x18] sm:$0xff]  ;;  %v233_v38 = vld [vmem:[%s1937_s2 + $0x8] sm:$0xff] }
  0x29   :  { %v104_v46 = vsel %vm100_vm1, %v84_v31, %v87_v41  ;;  %v105_v47 = vsel %vm103_vm2, %v93_v43, 2102212464  ;;  %v108_v48 = vsel %vm100_vm1, %v87_v41, %v90_v42  ;;  %v112_v49 = vsel %vm100_vm1, %v90_v42, %v93_v43  ;;  %v487_v50 = vld [vmem:[%s1941_s6 + $0x20] sm:$0xff] }
  0x2a   :  { %v106_v51 = vsel %vm102_vm4, %v90_v42, %v105_v47  ;;  %v109_v52 = vsel %vm103_vm2, %v96_v44, 920167782  ;;  %v113_v53 = vsel %vm103_vm2, %v99_v45, 1326507024  ;;  %317 = vperm.xlu1 %1417, %v303_v60   ;;  %312 = vperm.xlu0 %1416, %v302_v3   ;;  %v232_v42 = vld [vmem:[%s1937_s2] sm:$0xff]  ;;  %v488_v47 = vld [vmem:[%s1941_s6 + $0x28] sm:$0xff] }
  0x2b   :  { %v110_v55 = vsel %vm102_vm4, %v93_v43, %v109_v52  ;;  %v114_v56 = vsel %vm102_vm4, %v96_v44, %v113_v53  ;;  %v107_v57 = vsel %vm101_vm3, %v104_v46, %v106_v51  ;;  %v490_v43 = vld [vmem:[%s1941_s6 + $0x38] sm:$0xff]  ;;  %v489_v46 = vld [vmem:[%s1941_s6 + $0x30] sm:$0xff]  ;;  %v1418_v51 = vld [vmem:[%s1940_s5] sm:$0xff]  }
  0x2c   :  { %v111_v58 = vsel %vm101_vm3, %v108_v48, %v110_v55  ;;  %v115_v59 = vsel %vm101_vm3, %v112_v49, %v114_v56  ;;  %v123_v5 = vmul.u32 %v116_v39, %v107_v57  ;;  %1336 = vmatprep.mubr.bf16.mxu0 %v1418_v51  ;;  %v486_v52 = vld [vmem:[%s1941_s6 + $0x18] sm:$0xff]  ;;  %v484_v55 = vld [vmem:[%s1941_s6 + $0x8] sm:$0xff]  ;;  %v483_v57 = vld [vmem:[%s1941_s6] sm:$0xff] }
  0x2d   :  { %v1602_v61 = vmul.u32.u64.low %v116_v39, %v115_v59  ;;  %v1603_v62 = vmul.u32.u64.high %v116_v39, %v115_v59, %v1602_v61  ;;  %v1605_v63 = vmul.u32.u64.low %v116_v39, %v111_v58  ;;  %v1606_v1 = vmul.u32.u64.high %v116_v39, %v111_v58, %v1605_v63  ;;  %v667_v58 = vld [vmem:[%s1943_s8 + $0x38] sm:$0xff]  ;;  %v662_v3 = vld [vmem:[%s1943_s8 + $0x10] sm:$0xff] }
  0x2e   :  { %377 = vperm.xlu1 %1417, %v363_v4   ;;  %372 = vperm.xlu0 %1416, %v362_v8   ;;  %v666_v61 = vld [vmem:[%s1943_s8 + $0x30] sm:$0xff] }
  0x2f   :  { %vm125_vm5 = vc.u32 %v1603_v62, %v1605_v63  ;;  %v126_v6 = vadd.s32 1, %v1606_v1  ;;  %v124_v34 = vadd.s32 %v1605_v63, %v1603_v62  ;;  %v664_v63 = vld [vmem:[%s1943_s8 + $0x20] sm:$0xff] }
  0x31   :  { %v127_v9 = vsel %vm125_vm5, %v126_v6, %v1606_v1  ;;  %v663_v1 = vld [vmem:[%s1943_s8 + $0x18] sm:$0xff]  ;;  %v660_v6 = vld [vmem:[%s1943_s8] sm:$0xff] }
  0x32   :  { %v128_v10 = vadd.s32 %v127_v9, %v123_v5  ;;  %217 = vperm.xlu1 %1417, %v179_v11   ;;  %212 = vperm.xlu0 %1416, %v178_v13   ;;  %v661_v5 = vld [vmem:[%s1943_s8 + $0x8] sm:$0xff]  ;;  %v849_v9 = vld [vmem:[%s1945_s10 + $0x38] sm:$0xff] }
  0x33   :  { %v847_v13 = vld [vmem:[%s1945_s10 + $0x28] sm:$0xff] }
  0x34   :  { %v129_v12 = vadd.s32 536870912, %v128_v10 }
  0x36   :  { %v1626_v14 = vshrl.u32 %v129_v12, 30  ;;  %277 = vperm.xlu1 %1417, %v239_v15   ;;  %272 = vperm.xlu0 %1416, %v238_v17  }
  0x38   :  { %v131_v16 = vshll.u32 %v1626_v14, 30  ;;  %v154_v4 = vsub.s32 4, %v1626_v14 }
  0x3a   :  { %v132_v18 = vsub.s32 %v128_v10, %v131_v16  ;;  %207 = vperm.xlu1 %1417, %v177_v19   ;;  %202 = vperm.xlu0 %1416, %v176_v21   ;;  %v155_v8 = vsel %vm70_vm7, %v154_v4, %v1626_v14  ;;  %v848_v10 = vld [vmem:[%s1945_s10 + $0x30] sm:$0xff]  ;;  %v846_v16 = vld [vmem:[%s1945_s10 + $0x20] sm:$0xff]  ;;  %v845_v19 = vld [vmem:[%s1945_s10 + $0x18] sm:$0xff] }
  0x3b   :  { %v157_v11 = vsel %vm1705_vm8, 0, %v155_v8 }
  0x3c   :  { %v134_v20 = vsub.s32 0, %v132_v18  ;;  %v161_v15 = vand.u32 3, %v157_v11 }
  0x3e   :  { %v1246_v22 = vmin.u32 %v134_v20, %v132_v18  ;;  %267 = vperm.xlu1 %1417, %v237_v23   ;;  %262 = vperm.xlu0 %1416, %v236_v25   ;;  %vm163_vm9 = vcmp.eq.s32.totalorder %v161_v15, 0  ;;  %vm166_vm10 = vcmp.eq.s32.totalorder %v161_v15, 2  ;;  %v844_v20 = vld [vmem:[%s1945_s10 + $0x10] sm:$0xff]  ;;  %vm162_vm11 = vcmp.lt.s32.totalorder %v161_v15, 2  ;;  %v843_v23 = vld [vmem:[%s1945_s10 + $0x8] sm:$0xff] }
  0x3f   :  { %v220_v25 = vlaneseq }
  0x40   :  { %v136_v24 = vclz %v1246_v22 }
  0x42   :  { %v1247_v26 = vadd.s32 4294967294, %v136_v24  ;;  %197 = vperm.xlu1 %1417, %v175_v27   ;;  %192 = vperm.xlu0 %1416, %v174_v28   ;;  %v842_v24 = vld [vmem:[%s1945_s10] sm:$0xff]  ;;  %s1249_s10 = sld [smem:[#allocation2 + $0x1]] }
  0x43   :  { %v1223_v27 = vld [vmem:[%s1949_s14] sm:$0xff]  ;;  %s431_s14 = sld [smem:[#allocation2]] }
  0x44   :  { %vm1248_vm6 = vcmp.lt.s32.totalorder %v1247_v26, 0 }
  0x45   :  { %v139_v29 = vsel %vm1248_vm6, 0, %v1247_v26 }
  0x46   :  { %v144_v31 = vsub.s32 4294967266, %v139_v29  ;;  %257 = vperm.xlu1 %1417, %v235_v30   ;;  %252 = vperm.xlu0 %1416, %v234_v32   ;;  %v140_v35 = vsub.s32 32, %v139_v29  ;;  %v141_v39 = vshll.u32 %v132_v18, %v139_v29  ;;  %v1771_v29 = vshrl.u32 %v220_v25, 7 }
  0x48   :  { %v145_v36 = vadd.s32 127, %v144_v31  ;;  %v142_v40 = vshrl.u32 %v124_v34, %v140_v35  ;;  %v352_v30 = vsub.s32 1, %v1771_v29 }
  0x4a   :  { %187 = vperm.xlu1 %1417, %v173_v33   ;;  %182 = vperm.xlu0 %1416, %v172_v37   ;;  %v146_v41 = vshll.u32 %v145_v36, 23  ;;  %v143_v44 = vor.u32 %v142_v40, %v141_v39 }
  0x4c   :  { %v147_v45 = vor.u32 4788187, %v146_v41  ;;  %v150_v49 = vcvt.s32.f32 %v143_v44 }
  0x4e   :  { %247 = vperm.xlu1 %1417, %v233_v38   ;;  %242 = vperm.xlu0 %1416, %v232_v42   ;;  %v148_v48 = vand.u32 2147483647, %v147_v45  ;;  %v1787_v38 = vstv %s1249_s10 }
  0x50   :  { %v151_v53 = vmul.f32 %v150_v49, %v148_v48 }
  0x52   :  { %641 = vperm.xlu1 %1417, %v490_v43   ;;  %636 = vperm.xlu0 %1416, %v489_v46   ;;  %v152_v56 = vxor.u32 2147483648, %v151_v53 }
  0x54   :  { %v153_v60 = vsel %vm70_vm7, %v152_v56, %v151_v53 }
  0x55   :  { %v156_v62 = vsel %vm1705_vm8, %v1552_v0, %v153_v60 }
  0x56   :  { %631 = vperm.xlu1 %1417, %v488_v47   ;;  %626 = vperm.xlu0 %1416, %v487_v50   ;;  %1433 = vcosq.f32 %v156_v62 }
  0x57   :  { %1435 = vsinq.f32 %v156_v62 }
  0x5a   :  { %621 = vperm.xlu1 %1417, %v486_v52   ;;  %616 = vperm.xlu0 %1416, %v485_v54  }
  0x5e   :  { %611 = vperm.xlu1 %1417, %v484_v55   ;;  %606 = vperm.xlu0 %1416, %v483_v57  }
  0x62   :  { %823 = vperm.xlu1 %1417, %v667_v58   ;;  %818 = vperm.xlu0 %1416, %v666_v61  }
  0x63   :  { %v1434_v12 = vpop.eup %1433 }
  0x64   :  { %v1436_v14 = vpop.eup %1435  ;;  %v167_v18 = vxor.u32 2147483648, %v1434_v12 }
  0x65   :  { %v164_v17 = vxor.u32 2147483648, %v1436_v14 }
  0x66   :  { %813 = vperm.xlu1 %1417, %v665_v7   ;;  %808 = vperm.xlu0 %1416, %v664_v63   ;;  %v168_v22 = vsel %vm166_vm10, %v167_v18, %v1436_v14 }
  0x67   :  { %v165_v21 = vsel %vm163_vm9, %v1434_v12, %v164_v17 }
  0x68   :  { %v169_v26 = vsel %vm162_vm11, %v165_v21, %v168_v22 }
  0x69   :  { %v1769_v28 = vsel %vm160_vm12, nan, %v169_v26 }
  0x6a   :  { %803 = vperm.xlu1 %1417, %v663_v1   ;;  %798 = vperm.xlu0 %1416, %v662_v3   ;;  %vm171_vm13 = vcmp.gt.f32.partialorder %v1769_v28, 0.0  ;;  %v1779_v0 = vrot.slane %v1769_v28, %v352_v30 }
  0x6b   :  { %v1776_v31 = vsel %vm171_vm13, 1, %v1452_v2 }
  0x6c   :  { %v1782_v32 = vrot.slane %v1776_v31, %v352_v30 }
  0x6e   :  { %793 = vperm.xlu1 %1417, %v661_v5   ;;  %788 = vperm.xlu0 %1416, %v660_v6   ;;  %vm422_vm14 = vcmp.eq.s32.totalorder %v1782_v32, 1 }
  0x72   :  { %1004 = vperm.xlu1 %1417, %v849_v9   ;;  %999 = vperm.xlu0 %1416, %v848_v10  }
  0x76   :  { %994 = vperm.xlu1 %1417, %v847_v13   ;;  %989 = vperm.xlu0 %1416, %v846_v16  }
  0x7a   :  { %984 = vperm.xlu1 %1417, %v845_v19   ;;  %979 = vperm.xlu0 %1416, %v844_v20   ;;  %v222_v19 = vsub.s32 0, %v1771_v29 }
  0x7c   :  { %v1825_v26 = vrot.slane %v1776_v31, %v222_v19 }
  0x7e   :  { %974 = vperm.xlu1 %1417, %v843_v23   ;;  %969 = vperm.xlu0 %1416, %v842_v24   ;;  %vm293_vm7 = vcmp.eq.s32.totalorder %v1825_v26, 1  ;;  %v1421_v26 = vld [vmem:[%s1940_s5 + $0x18] sm:$0xff]  }
  0x82   :  { %1226 = vperm.xlu0 %1416, %v1223_v27  }
  0x8d   :  { %v403_v33 = vpop.permute.xlu1 %402  ;;  %v343_v35 = vpop.permute.xlu0 %342 }
  0x8e   :  { %v416_v34 = vmul.f32 %v403_v33, %v1779_v0  ;;  %v360_v36 = vmul.f32 %v1779_v0, %v343_v35  ;;  %v1831_v33 = vrot.slane %v1769_v28, %v222_v19 }
  0x90   :  { %v429_v2 = vsel %vm422_vm14, %v360_v36, %v416_v34 }
  0x91   :  { %v408_v37 = vpop.permute.xlu1 %407  ;;  %v348_v40 = vpop.permute.xlu0 %347  ;;  %v473_v42 = vmul.f32 %v1787_v38, %v429_v2  ;;  %vm464_vm15 = vcmp.gt.f32.partialorder %v429_v2, 0.0 }
  0x92   :  { %v417_v39 = vmul.f32 %v408_v37, %v1779_v0  ;;  %v361_v41 = vmul.f32 %v1779_v0, %v348_v40 }
  0x93   :  { %v481_v47 = vsel %vm464_vm15, %v429_v2, %v473_v42 }
  0x94   :  { %v430_v44 = vsel %vm422_vm14, %v361_v41, %v417_v39  ;;  %v1836_v39 = vstv %s431_s14  ;;  %s1270_s14 = sld [smem:[#allocation2 + $0x2]] }
  0x95   :  { %v338_v43 = vpop.permute.xlu1 %337  ;;  %v333_v45 = vpop.permute.xlu0 %332  ;;  %vm465_vm0 = vcmp.gt.f32.partialorder %v430_v44, 0.0  ;;  %v474_v46 = vmul.f32 %v1787_v38, %v430_v44 }
  0x96   :  { %v359_v51 = vmul.f32 %v1779_v0, %v338_v43  ;;  %v358_v54 = vmul.f32 %v1779_v0, %v333_v45 }
  0x97   :  { %v482_v48 = vsel %vm465_vm0, %v430_v44, %v474_v46  ;;  %vm700_vm0 = vcmask 523264  }
  0x98   :  { %v506_v50 = vpack.c.bf16 %v482_v48, %v481_v47 }
  0x99   :  { %v398_v49 = vpop.permute.xlu1 %397  ;;  %v393_v53 = vpop.permute.xlu0 %392 }
  0x9a   :  { %v415_v52 = vmul.f32 %v398_v49, %v1779_v0  ;;  %v414_v55 = vmul.f32 %v393_v53, %v1779_v0  ;;  %1320 = vmatprep.subr.bf16.mxu0 %v506_v50 }
  0x9b   :  { %1321 = vmatpush3.bf16.msra.mxu0 %v506_v50 }
  0x9c   :  { %v428_v56 = vsel %vm422_vm14, %v359_v51, %v415_v52  ;;  %v427_v58 = vsel %vm422_vm14, %v358_v54, %v414_v55 }
  0x9d   :  { %v472_v57 = vmul.f32 %v1787_v38, %v428_v56  ;;  %v328_v59 = vpop.permute.xlu1 %327  ;;  %vm463_vm1 = vcmp.gt.f32.partialorder %v428_v56, 0.0  ;;  %v471_v60 = vmul.f32 %v1787_v38, %v427_v58  ;;  %v323_v61 = vpop.permute.xlu0 %322  ;;  %vm462_vm2 = vcmp.gt.f32.partialorder %v427_v58, 0.0 }
  0x9e   :  { %v357_v3 = vmul.f32 %v1779_v0, %v328_v59  ;;  %v356_v6 = vmul.f32 %v1779_v0, %v323_v61 }
  0x9f   :  { %v480_v62 = vsel %vm463_vm1, %v428_v56, %v472_v57  ;;  %v479_v7 = vsel %vm462_vm2, %v427_v58, %v471_v60 }
  0xa0   :  { %v505_v1 = vpack.c.bf16 %v480_v62, %v479_v7 }
  0xa1   :  { %v388_v63 = vpop.permute.xlu1 %387  ;;  %v383_v5 = vpop.permute.xlu0 %382 }
  0xa2   :  { %v413_v4 = vmul.f32 %v388_v63, %v1779_v0  ;;  %v412_v8 = vmul.f32 %v383_v5, %v1779_v0  ;;  %1322 = vmatprep.subr.bf16.mxu0 %v505_v1 }
  0xa3   :  { %1323 = vmatpush3.bf16.msra.mxu0 %v505_v1 }
  0xa4   :  { %v426_v9 = vsel %vm422_vm14, %v357_v3, %v413_v4  ;;  %v425_v11 = vsel %vm422_vm14, %v356_v6, %v412_v8 }
  0xa5   :  { %v470_v10 = vmul.f32 %v1787_v38, %v426_v9  ;;  %v318_v12 = vpop.permute.xlu1 %317  ;;  %vm461_vm3 = vcmp.gt.f32.partialorder %v426_v9, 0.0  ;;  %v469_v13 = vmul.f32 %v1787_v38, %v425_v11  ;;  %v313_v14 = vpop.permute.xlu0 %312  ;;  %vm460_vm4 = vcmp.gt.f32.partialorder %v425_v11, 0.0 }
  0xa6   :  { %v355_v20 = vmul.f32 %v1779_v0, %v318_v12  ;;  %v354_v23 = vmul.f32 %v1779_v0, %v313_v14 }
  0xa7   :  { %v478_v15 = vsel %vm461_vm3, %v426_v9, %v470_v10  ;;  %v477_v16 = vsel %vm460_vm4, %v425_v11, %v469_v13 }
  0xa8   :  { %v504_v18 = vpack.c.bf16 %v478_v15, %v477_v16 }
  0xa9   :  { %v378_v17 = vpop.permute.xlu1 %377  ;;  %v373_v22 = vpop.permute.xlu0 %372 }
  0xaa   :  { %v411_v21 = vmul.f32 %v378_v17, %v1779_v0  ;;  %v410_v24 = vmul.f32 %v373_v22, %v1779_v0  ;;  %1324 = vmatprep.subr.bf16.mxu0 %v504_v18 }
  0xab   :  { %1325 = vmatpush3.bf16.msra.mxu0 %v504_v18 }
  0xac   :  { %v424_v25 = vsel %vm422_vm14, %v355_v20, %v411_v21  ;;  %v423_v29 = vsel %vm422_vm14, %v354_v23, %v410_v24 }
  0xad   :  { %v468_v27 = vmul.f32 %v1787_v38, %v424_v25  ;;  %v218_v30 = vpop.permute.xlu1 %217  ;;  %vm459_vm5 = vcmp.gt.f32.partialorder %v424_v25, 0.0  ;;  %v467_v0 = vmul.f32 %v1787_v38, %v423_v29  ;;  %v213_v34 = vpop.permute.xlu0 %212  ;;  %vm458_vm6 = vcmp.gt.f32.partialorder %v423_v29, 0.0 }
  0xae   :  { %v231_v2 = vmul.f32 %v1831_v33, %v218_v30  ;;  %v230_v28 = vmul.f32 %v1831_v33, %v213_v34 }
  0xaf   :  { %v476_v35 = vsel %vm459_vm5, %v424_v25, %v468_v27  ;;  %v475_v36 = vsel %vm458_vm6, %v423_v29, %v467_v0 }
  0xb0   :  { %v503_v37 = vpack.c.bf16 %v476_v35, %v475_v36  ;;  %v1420_v35 = vld [vmem:[%s1940_s5 + $0x10] sm:$0xff]   ;;  %v1422_v36 = vld [vmem:[%s1942_s7] sm:$0xff]  }
  0xb1   :  { %v278_v31 = vpop.permute.xlu1 %277  ;;  %v273_v40 = vpop.permute.xlu0 %272  ;;  %1352 = vmatprep.mubr.msk.bf16.mxu1 %vm700_vm0, %v1422_v36 }
  0xb2   :  { %v287_v32 = vmul.f32 %v278_v31, %v1831_v33  ;;  %v286_v41 = vmul.f32 %v273_v40, %v1831_v33  ;;  %1326 = vmatprep.subr.bf16.mxu0 %v503_v37 }
  0xb3   :  { %1327 = vmatpush3.bf16.msra.mxu0 %v503_v37 }
  0xb4   :  { %v301_v38 = vsel %vm293_vm7, %v231_v2, %v287_v32  ;;  %v300_v43 = vsel %vm293_vm7, %v230_v28, %v286_v41 }
  0xb5   :  { %v448_v42 = vmul.f32 %v1836_v39, %v301_v38  ;;  %v208_v44 = vpop.permute.xlu1 %207  ;;  %vm439_vm8 = vcmp.gt.f32.partialorder %v301_v38, 0.0  ;;  %v447_v45 = vmul.f32 %v1836_v39, %v300_v43  ;;  %v203_v46 = vpop.permute.xlu0 %202  ;;  %vm438_vm9 = vcmp.gt.f32.partialorder %v300_v43, 0.0 }
  0xb6   :  { %v229_v51 = vmul.f32 %v1831_v33, %v208_v44  ;;  %v228_v54 = vmul.f32 %v1831_v33, %v203_v46 }
  0xb7   :  { %v456_v47 = vsel %vm439_vm8, %v301_v38, %v448_v42  ;;  %v455_v48 = vsel %vm438_vm9, %v300_v43, %v447_v45 }
  0xb8   :  { %v502_v50 = vpack.c.bf16 %v456_v47, %v455_v48 }
  0xb9   :  { %v268_v49 = vpop.permute.xlu1 %267  ;;  %v263_v53 = vpop.permute.xlu0 %262 }
  0xba   :  { %v285_v52 = vmul.f32 %v268_v49, %v1831_v33  ;;  %v284_v55 = vmul.f32 %v263_v53, %v1831_v33  ;;  %1328 = vmatprep.subr.bf16.mxu0 %v502_v50 }
  0xbb   :  { %1329 = vmatpush3.bf16.msra.mxu0 %v502_v50 }
  0xbc   :  { %v299_v56 = vsel %vm293_vm7, %v229_v51, %v285_v52  ;;  %v298_v58 = vsel %vm293_vm7, %v228_v54, %v284_v55 }
  0xbd   :  { %v446_v57 = vmul.f32 %v1836_v39, %v299_v56  ;;  %v198_v59 = vpop.permute.xlu1 %197  ;;  %vm437_vm10 = vcmp.gt.f32.partialorder %v299_v56, 0.0  ;;  %v445_v60 = vmul.f32 %v1836_v39, %v298_v58  ;;  %v193_v61 = vpop.permute.xlu0 %192  ;;  %vm436_vm11 = vcmp.gt.f32.partialorder %v298_v58, 0.0 }
  0xbe   :  { %v227_v3 = vmul.f32 %v1831_v33, %v198_v59  ;;  %v226_v6 = vmul.f32 %v1831_v33, %v193_v61 }
  0xbf   :  { %v454_v62 = vsel %vm437_vm10, %v299_v56, %v446_v57  ;;  %v453_v7 = vsel %vm436_vm11, %v298_v58, %v445_v60 }
  0xc0   :  { %v501_v1 = vpack.c.bf16 %v454_v62, %v453_v7 }
  0xc1   :  { %v258_v63 = vpop.permute.xlu1 %257  ;;  %v253_v5 = vpop.permute.xlu0 %252 }
  0xc2   :  { %v283_v4 = vmul.f32 %v258_v63, %v1831_v33  ;;  %v282_v8 = vmul.f32 %v253_v5, %v1831_v33  ;;  %1330 = vmatprep.subr.bf16.mxu0 %v501_v1 }
  0xc3   :  { %1331 = vmatpush3.bf16.msra.mxu0 %v501_v1 }
  0xc4   :  { %v297_v9 = vsel %vm293_vm7, %v227_v3, %v283_v4  ;;  %v296_v11 = vsel %vm293_vm7, %v226_v6, %v282_v8  ;;  %v1423_v6 = vld [vmem:[%s1942_s7 + $0x8] sm:$0xff]   ;;  %v1424_v8 = vld [vmem:[%s1942_s7 + $0x10] sm:$0xff]  }
  0xc5   :  { %v444_v10 = vmul.f32 %v1836_v39, %v297_v9  ;;  %v188_v12 = vpop.permute.xlu1 %187  ;;  %vm435_vm12 = vcmp.gt.f32.partialorder %v297_v9, 0.0  ;;  %v443_v13 = vmul.f32 %v1836_v39, %v296_v11  ;;  %v183_v14 = vpop.permute.xlu0 %182  ;;  %vm434_vm13 = vcmp.gt.f32.partialorder %v296_v11, 0.0 }
  0xc6   :  { %v225_v19 = vmul.f32 %v1831_v33, %v188_v12  ;;  %v224_v22 = vmul.f32 %v1831_v33, %v183_v14 }
  0xc7   :  { %v452_v15 = vsel %vm435_vm12, %v297_v9, %v444_v10  ;;  %v451_v16 = vsel %vm434_vm13, %v296_v11, %v443_v13  ;;  %v1425_v9 = vld [vmem:[%s1942_s7 + $0x18] sm:$0xff]   ;;  %v1426_v10 = vld [vmem:[%s1944_s9] sm:$0xff]  }
  0xc8   :  { %v500_v18 = vpack.c.bf16 %v452_v15, %v451_v16 }
  0xc9   :  { %v248_v17 = vpop.permute.xlu1 %247  ;;  %v243_v21 = vpop.permute.xlu0 %242 }
  0xca   :  { %v281_v20 = vmul.f32 %v248_v17, %v1831_v33  ;;  %v280_v23 = vmul.f32 %v243_v21, %v1831_v33  ;;  %1332 = vmatprep.subr.bf16.mxu0 %v500_v18  ;;  %v1419_v33 = vld [vmem:[%s1940_s5 + $0x8] sm:$0xff]  }
  0xcb   :  { %1333 = vmatpush3.bf16.msra.mxu0 %v500_v18 }
  0xcc   :  { %v295_v24 = vsel %vm293_vm7, %v225_v19, %v281_v20  ;;  %v294_v27 = vsel %vm293_vm7, %v224_v22, %v280_v23 }
  0xcd   :  { %v442_v25 = vmul.f32 %v1836_v39, %v295_v24  ;;  %vm433_vm14 = vcmp.gt.f32.partialorder %v295_v24, 0.0  ;;  %v441_v29 = vmul.f32 %v1836_v39, %v294_v27  ;;  %vm432_vm15 = vcmp.gt.f32.partialorder %v294_v27, 0.0  ;;  %v642_v31 = vpop.permute.xlu1 %641  ;;  %v637_v2 = vpop.permute.xlu0 %636 }
  0xcf   :  { %v450_v30 = vsel %vm433_vm14, %v295_v24, %v442_v25  ;;  %v449_v0 = vsel %vm432_vm15, %v294_v27, %v441_v29 }
  0xd0   :  { %v499_v34 = vpack.c.bf16 %v450_v30, %v449_v0 }
  0xd1   :  { %v632_v40 = vpop.permute.xlu1 %631  ;;  %v627_v41 = vpop.permute.xlu0 %626 }
  0xd2   :  { %1334 = vmatprep.subr.bf16.mxu0 %v499_v34 }
  0xd3   :  { %1335 = vmatpush3.bf16.msra.mxu0 %v499_v34 }
  0xd5   :  { %v622_v44 = vpop.permute.xlu1 %621  ;;  %v617_v48 = vpop.permute.xlu0 %616 }
  0xd6   :  { %1337 = vmatmul.mubr.bf16.vlgmr.msra.gmra.mxu0 %v1419_v33 }
  0xd7   :  { %1340 = vmatprep.mubr.bf16.mxu0 %v1420_v35 }
  0xd9   :  { %v612_v58 = vpop.permute.xlu1 %611  ;;  %v607_v62 = vpop.permute.xlu0 %606 }
  0xdd   :  { %v824_v11 = vpop.permute.xlu1 %823  ;;  %v819_v13 = vpop.permute.xlu0 %818 }
  0xde   :  { %1341 = vmatmul.mubr.bf16.gmra.mxu0 %v1421_v26 }
  0xe1   :  { %v814_v16 = vpop.permute.xlu1 %813  ;;  %v809_v18 = vpop.permute.xlu0 %808 }
  0xe5   :  { %v804_v22 = vpop.permute.xlu1 %803  ;;  %v799_v27 = vpop.permute.xlu0 %798 }
 0x196   :  { %v1338_v37 = vpop.f32.mrf.mxu0 }
 0x197   :  { %v646_v55 = vmul.f32 %v1338_v37, %v617_v48  ;;  %vm598_vm6 = vcmp.gt.f32.partialorder %v1338_v37, 0.0  ;;  %v1430_v48 = vld [vmem:[%s1946_s11] sm:$0xff]  }
 0x198   :  { %v565_v39 = vpop.f32.mrf.mxu0  ;;  %1384 = vmatprep.mubr.msk.bf16.mxu0 %vm700_vm0, %v1430_v48 }
 0x199   :  { %v654_v7 = vsel %vm598_vm6, %v1338_v37, %v646_v55  ;;  %v644_v63 = vmul.f32 %v607_v62, %v565_v39  ;;  %vm596_vm8 = vcmp.gt.f32.partialorder %v565_v39, 0.0  ;;  %v794_v37 = vpop.permute.xlu1 %793 }
 0x19a   :  { %v1339_v32 = vpop.f32.mrf.mxu0 }
 0x19b   :  { %v647_v49 = vmul.f32 %v1339_v32, %v622_v44  ;;  %vm599_vm5 = vcmp.gt.f32.partialorder %v1339_v32, 0.0  ;;  %v652_v4 = vsel %vm596_vm8, %v565_v39, %v644_v63 }
 0x19c   :  { %v568_v28 = vpop.f32.mrf.mxu0 }
 0x19d   :  { %v655_v60 = vsel %vm599_vm5, %v1339_v32, %v647_v49  ;;  %v645_v61 = vmul.f32 %v612_v58, %v568_v28  ;;  %vm597_vm7 = vcmp.gt.f32.partialorder %v568_v28, 0.0  ;;  %v1005_v49 = vpop.permute.xlu1 %1004 }
 0x19e   :  { %v1342_v38 = vpop.f32.mrf.mxu0  ;;  %v677_v1 = vpack.c.bf16 %v655_v60, %v654_v7 }
 0x19f   :  { %v650_v43 = vmul.f32 %v1342_v38, %v637_v2  ;;  %vm602_vm1 = vcmp.gt.f32.partialorder %v1342_v38, 0.0  ;;  %v653_v3 = vsel %vm597_vm7, %v568_v28, %v645_v61 }
 0x1a0   :  { %v581_v42 = vpop.f32.mrf.mxu0  ;;  %v676_v5 = vpack.c.bf16 %v653_v3, %v652_v4 }
 0x1a1   :  { %v648_v46 = vmul.f32 %v627_v41, %v581_v42  ;;  %vm600_vm3 = vcmp.gt.f32.partialorder %v581_v42, 0.0  ;;  %v658_v52 = vsel %vm602_vm1, %v1342_v38, %v650_v43 }
 0x1a2   :  { %v1343_v45 = vpop.f32.mrf.mxu0 }
 0x1a3   :  { %vm603_vm2 = vcmp.gt.f32.partialorder %v1343_v45, 0.0  ;;  %v651_v47 = vmul.f32 %v1343_v45, %v642_v31  ;;  %v656_v56 = vsel %vm600_vm3, %v581_v42, %v648_v46  ;;  %v1428_v46 = vld [vmem:[%s1944_s9 + $0x10] sm:$0xff]  }
 0x1a4   :  { %v584_v50 = vpop.f32.mrf.mxu0 }
 0x1a5   :  { %vm601_vm4 = vcmp.gt.f32.partialorder %v584_v50, 0.0  ;;  %v649_v51 = vmul.f32 %v632_v40, %v584_v50  ;;  %v659_v53 = vsel %vm603_vm2, %v1343_v45, %v651_v47  ;;  %v789_v40 = vpop.permute.xlu0 %788  ;;  %v1427_v45 = vld [vmem:[%s1944_s9 + $0x8] sm:$0xff]   ;;  %v1429_v47 = vld [vmem:[%s1944_s9 + $0x18] sm:$0xff]  }
 0x1a6   :  { %v679_v54 = vpack.c.bf16 %v659_v53, %v658_v52 }
 0x1a7   :  { %v657_v57 = vsel %vm601_vm4, %v584_v50, %v649_v51 }
 0x1a8   :  { %1344 = vmatprep.subr.bf16.mxu1 %v679_v54  ;;  %v678_v59 = vpack.c.bf16 %v657_v57, %v656_v56 }
 0x1a9   :  { %1345 = vmatpush3.bf16.msra.mxu1 %v679_v54  ;;  %v1000_v51 = vpop.permute.xlu0 %999  ;;  %v995_v54 = vpop.permute.xlu1 %994 }
 0x1aa   :  { %1346 = vmatprep.subr.bf16.mxu1 %v678_v59 }
 0x1ad   :  { %1347 = vmatpush3.bf16.msra.mxu1 %v678_v59  ;;  %v990_v56 = vpop.permute.xlu0 %989  ;;  %v985_v60 = vpop.permute.xlu1 %984 }
 0x1ae   :  { %1348 = vmatprep.subr.bf16.mxu1 %v677_v1 }
 0x1b1   :  { %1349 = vmatpush3.bf16.msra.mxu1 %v677_v1  ;;  %v980_v63 = vpop.permute.xlu0 %979 }
 0x1b2   :  { %1350 = vmatprep.subr.bf16.mxu1 %v676_v5 }
 0x1b5   :  { %1351 = vmatpush3.bf16.msra.mxu1 %v676_v5 }
 0x1b8   :  { %1353 = vmatmul.mubr.msk.bf16.vlgmr.msra.gmra.mxu1 %vm700_vm0, %v1423_v6 }
 0x1b9   :  { %1356 = vmatprep.mubr.msk.bf16.mxu1 %vm700_vm0, %v1424_v8 }
 0x1c0   :  { %1357 = vmatmul.mubr.msk.bf16.gmra.mxu1 %vm700_vm0, %v1425_v9 }
 0x1c1   :  { %1368 = vmatprep.mubr.msk.bf16.mxu1 %vm700_vm0, %v1426_v10 }
 0x278   :  { %v1354_v12 = vpop.f32.mrf.mxu1 }
 0x279   :  { %v828_v26 = vmul.f32 %v1354_v12, %v799_v27  ;;  %vm780_vm14 = vcmp.gt.f32.partialorder %v1354_v12, 0.0 }
 0x27a   :  { %v747_v14 = vpop.f32.mrf.mxu1 }
 0x27b   :  { %v836_v28 = vsel %vm780_vm14, %v1354_v12, %v828_v26  ;;  %v826_v41 = vmul.f32 %v789_v40, %v747_v14  ;;  %vm778_vm1 = vcmp.gt.f32.partialorder %v747_v14, 0.0  ;;  %v975_v12 = vpop.permute.xlu1 %974  ;;  %v1432_v40 = vld [vmem:[%s1947_s12] sm:$0xff]   ;;  %vm1120_vm14 = vcmask 261120   ;;  %s1278_s12 = sld [smem:[#allocation2 + $0x4]] }
 0x27c   :  { %v1355_v15 = vpop.f32.mrf.mxu1 }
 0x27d   :  { %v829_v29 = vmul.f32 %v1355_v15, %v804_v22  ;;  %vm781_vm13 = vcmp.gt.f32.partialorder %v1355_v15, 0.0  ;;  %v834_v43 = vsel %vm778_vm1, %v747_v14, %v826_v41  ;;  %v1167_v41 = vstv %s1275_s0 }
 0x27e   :  { %v750_v17 = vpop.f32.mrf.mxu1 }
 0x27f   :  { %v837_v39 = vsel %vm781_vm13, %v1355_v15, %v829_v29  ;;  %v827_v32 = vmul.f32 %v794_v37, %v750_v17  ;;  %vm779_vm15 = vcmp.gt.f32.partialorder %v750_v17, 0.0 }
 0x280   :  { %v1358_v19 = vpop.f32.mrf.mxu1  ;;  %v859_v38 = vpack.c.bf16 %v837_v39, %v836_v28 }
 0x281   :  { %v832_v21 = vmul.f32 %v1358_v19, %v819_v13  ;;  %vm784_vm9 = vcmp.gt.f32.partialorder %v1358_v19, 0.0  ;;  %v835_v42 = vsel %vm779_vm15, %v750_v17, %v827_v32 }
 0x282   :  { %v763_v20 = vpop.f32.mrf.mxu1  ;;  %v858_v44 = vpack.c.bf16 %v835_v42, %v834_v43 }
 0x283   :  { %v830_v24 = vmul.f32 %v809_v18, %v763_v20  ;;  %vm782_vm11 = vcmp.gt.f32.partialorder %v763_v20, 0.0  ;;  %v840_v0 = vsel %vm784_vm9, %v1358_v19, %v832_v21 }
 0x284   :  { %v1359_v23 = vpop.f32.mrf.mxu1 }
 0x285   :  { %vm785_vm10 = vcmp.gt.f32.partialorder %v1359_v23, 0.0  ;;  %v833_v25 = vmul.f32 %v1359_v23, %v824_v11  ;;  %v838_v36 = vsel %vm782_vm11, %v763_v20, %v830_v24  ;;  %v1459_v24 = vmov 0.0  }
 0x286   :  { %v766_v30 = vpop.f32.mrf.mxu1 }
 0x287   :  { %v841_v34 = vsel %vm785_vm10, %v1359_v23, %v833_v25  ;;  %vm783_vm12 = vcmp.gt.f32.partialorder %v766_v30, 0.0  ;;  %v831_v33 = vmul.f32 %v814_v16, %v766_v30  ;;  %v970_v16 = vpop.permute.xlu0 %969  ;;  %v1431_v23 = vld [vmem:[%s1946_s11 + $0x8] sm:$0xff]   ;;  %vm1460_vm10 = vmmov 0  }
 0x288   :  { %v861_v35 = vpack.c.bf16 %v841_v34, %v840_v0  ;;  %v1101_v25 = vstv %s1270_s14 }
 0x289   :  { %v839_v31 = vsel %vm783_vm12, %v766_v30, %v831_v33 }
 0x28a   :  { %1360 = vmatprep.subr.bf16.mxu1 %v861_v35  ;;  %v860_v2 = vpack.c.bf16 %v839_v31, %v838_v36 }
 0x28b   :  { %1361 = vmatpush3.bf16.msra.mxu1 %v861_v35 }
 0x28c   :  { %1362 = vmatprep.subr.bf16.mxu1 %v860_v2 }
 0x28f   :  { %1363 = vmatpush3.bf16.msra.mxu1 %v860_v2 }
 0x290   :  { %1364 = vmatprep.subr.bf16.mxu1 %v859_v38 }
 0x293   :  { %1365 = vmatpush3.bf16.msra.mxu1 %v859_v38 }
 0x294   :  { %1366 = vmatprep.subr.bf16.mxu1 %v858_v44 }
 0x297   :  { %1367 = vmatpush3.bf16.msra.mxu1 %v858_v44 }
 0x298   :  { %1388 = vmatprep.subr.bf16.mxu1 %v1459_v24 }
 0x29a   :  { %1369 = vmatmul.mubr.msk.bf16.vlgmr.msra.gmra.mxu1 %vm700_vm0, %v1427_v45 }
 0x29b   :  { %1372 = vmatprep.mubr.msk.bf16.mxu1 %vm700_vm0, %v1428_v46 }
 0x2a2   :  { %1373 = vmatmul.mubr.msk.bf16.gmra.mxu1 %vm700_vm0, %v1429_v47 }
 0x2a3   :  { %1392 = vmatprep.mubr.msk.bf16.mxu1 %vm1460_vm10, %v1459_v24 }
 0x35a   :  { %v1370_v50 = vpop.f32.mrf.mxu1 }
 0x35b   :  { %v1009_v9 = vmul.f32 %v1370_v50, %v980_v63  ;;  %vm961_vm7 = vcmp.gt.f32.partialorder %v1370_v50, 0.0  ;;  %v1237_v63 = vstv %s1280_s18 }
 0x35c   :  { %v928_v52 = vpop.f32.mrf.mxu1 }
 0x35d   :  { %v1017_v17 = vsel %vm961_vm7, %v1370_v50, %v1009_v9  ;;  %v1007_v18 = vmul.f32 %v970_v16, %v928_v52  ;;  %vm959_vm9 = vcmp.gt.f32.partialorder %v928_v52, 0.0  ;;  %v1220_v50 = vstv %s1278_s12 }
 0x35e   :  { %v1371_v53 = vpop.f32.mrf.mxu1 }
 0x35f   :  { %v1010_v1 = vmul.f32 %v1371_v53, %v985_v60  ;;  %vm962_vm6 = vcmp.gt.f32.partialorder %v1371_v53, 0.0  ;;  %v1015_v21 = vsel %vm959_vm9, %v928_v52, %v1007_v18 }
 0x360   :  { %v931_v55 = vpop.f32.mrf.mxu1 }
 0x361   :  { %v1018_v14 = vsel %vm962_vm6, %v1371_v53, %v1010_v1  ;;  %v1008_v15 = vmul.f32 %v975_v12, %v931_v55  ;;  %vm960_vm8 = vcmp.gt.f32.partialorder %v931_v55, 0.0 }
 0x362   :  { %v1374_v57 = vpop.f32.mrf.mxu1  ;;  %v1029_v19 = vpack.c.bf16 %v1018_v14, %v1017_v17 }
 0x363   :  { %v1013_v59 = vmul.f32 %v1374_v57, %v1000_v51  ;;  %vm965_vm2 = vcmp.gt.f32.partialorder %v1374_v57, 0.0  ;;  %v1016_v20 = vsel %vm960_vm8, %v931_v55, %v1008_v15 }
 0x364   :  { %v944_v58 = vpop.f32.mrf.mxu1  ;;  %v1028_v22 = vpack.c.bf16 %v1016_v20, %v1015_v21 }
 0x365   :  { %v1011_v62 = vmul.f32 %v990_v56, %v944_v58  ;;  %vm963_vm4 = vcmp.gt.f32.partialorder %v944_v58, 0.0  ;;  %v1021_v4 = vsel %vm965_vm2, %v1374_v57, %v1013_v59  ;;  %vm1175_vm2 = vcmask 130048  }
 0x366   :  { %v1375_v61 = vpop.f32.mrf.mxu1 }
 0x367   :  { %vm966_vm3 = vcmp.gt.f32.partialorder %v1375_v61, 0.0  ;;  %v1014_v7 = vmul.f32 %v1375_v61, %v1005_v49  ;;  %v1019_v10 = vsel %vm963_vm4, %v944_v58, %v1011_v62  ;;  %v1173_v49 = vld [vmem:[%s1948_s13] sm:$0xf] }
 0x368   :  { %v947_v3 = vpop.f32.mrf.mxu1 }
 0x369   :  { %v1022_v5 = vsel %vm966_vm3, %v1375_v61, %v1014_v7  ;;  %vm964_vm5 = vcmp.gt.f32.partialorder %v947_v3, 0.0  ;;  %v1012_v6 = vmul.f32 %v995_v54, %v947_v3  ;;  %v1227_v54 = vpop.permute.xlu0 %1226 }
 0x36a   :  { %v1031_v8 = vpack.c.bf16 %v1022_v5, %v1021_v4 }
 0x36b   :  { %v1020_v11 = vsel %vm964_vm5, %v947_v3, %v1012_v6 }
 0x36c   :  { %1376 = vmatprep.subr.bf16.mxu0 %v1031_v8  ;;  %v1030_v13 = vpack.c.bf16 %v1020_v11, %v1019_v10 }
 0x36d   :  { %1377 = vmatpush3.bf16.msra.mxu0 %v1031_v8 }
 0x36e   :  { %1378 = vmatprep.subr.bf16.mxu0 %v1030_v13 }
 0x371   :  { %1379 = vmatpush3.bf16.msra.mxu0 %v1030_v13 }
 0x372   :  { %1380 = vmatprep.subr.bf16.mxu0 %v1029_v19 }
 0x375   :  { %1381 = vmatpush3.bf16.msra.mxu0 %v1029_v19 }
 0x376   :  { %1382 = vmatprep.subr.bf16.mxu0 %v1028_v22 }
 0x379   :  { %1383 = vmatpush3.bf16.msra.mxu0 %v1028_v22 }
 0x37a   :  { %1396 = vmatprep.subr.bf16.mxu0 %v1459_v24 }
 0x37c   :  { %1385 = vmatmul.mubr.msk.bf16.vlgmr.msra.gmra.mxu0 %vm700_vm0, %v1431_v23 }
 0x37d   :  { %1398 = vmatprep.mubr.msk.bf16.mxu0 %vm1460_vm10, %v1459_v24 }
 0x43c   :  { %v1386_v27 = vpop.f32.mrf.mxu0 }
 0x43d   :  { %v1104_v29 = vmul.f32 %v1386_v27, %v1101_v25  ;;  %vm1099_vm11 = vcmp.gt.f32.partialorder %v1386_v27, 0.0 }
 0x43e   :  { %v1082_v30 = vpop.f32.mrf.mxu0 }
 0x43f   :  { %v1108_v33 = vsel %vm1099_vm11, %v1386_v27, %v1104_v29  ;;  %v1102_v26 = vmul.f32 %v1101_v25, %v1082_v30  ;;  %vm1097_vm13 = vcmp.gt.f32.partialorder %v1082_v30, 0.0 }
 0x440   :  { %v1387_v0 = vpop.f32.mrf.mxu0 }
 0x441   :  { %vm1100_vm12 = vcmp.gt.f32.partialorder %v1387_v0, 0.0  ;;  %v1105_v34 = vmul.f32 %v1387_v0, %v1101_v25  ;;  %v1106_v39 = vsel %vm1097_vm13, %v1082_v30, %v1102_v26 }
 0x442   :  { %v1085_v35 = vpop.f32.mrf.mxu0 }
 0x443   :  { %v1109_v36 = vsel %vm1100_vm12, %v1387_v0, %v1105_v34  ;;  %vm1098_vm0 = vcmp.gt.f32.partialorder %v1085_v35, 0.0  ;;  %v1103_v31 = vmul.f32 %v1101_v25, %v1085_v35 }
 0x444   :  { %v1114_v37 = vpack.c.bf16 %v1109_v36, %v1108_v33 }
 0x445   :  { %v1107_v2 = vsel %vm1098_vm0, %v1085_v35, %v1103_v31 }
 0x446   :  { %1389 = vmatpush3.bf16.msra.mxu1 %v1114_v37  ;;  %v1113_v32 = vpack.c.bf16 %v1107_v2, %v1106_v39 }
 0x447   :  { %1390 = vmatprep.subr.bf16.mxu1 %v1459_v24 }
 0x44a   :  { %1391 = vmatpush3.bf16.msra.mxu1 %v1113_v32 }
 0x44d   :  { %1393 = vmatmul.mubr.msk.bf16.vlgmr.msra.gmra.mxu1 %vm1120_vm14, %v1432_v40 }
 0x50d   :  { %v1158_v28 = vpop.f32.mrf.mxu1 }
 0x50e   :  { %v1168_v42 = vmul.f32 %v1167_v41, %v1158_v28  ;;  %vm1165_vm15 = vcmp.gt.f32.partialorder %v1158_v28, 0.0 }
 0x50f   :  { %v1394_v38 = vpop.f32.mrf.mxu1 }
 0x510   :  { %v1170_v46 = vsel %vm1165_vm15, %v1158_v28, %v1168_v42 }
 0x511   :  { %v1161_v43 = vpop.f32.mrf.mxu1 }
 0x512   :  { %vm1166_vm1 = vcmp.gt.f32.partialorder %v1161_v43, 0.0  ;;  %v1169_v44 = vmul.f32 %v1167_v41, %v1161_v43 }
 0x513   :  { %v1395_v45 = vpop.f32.mrf.mxu1 }
 0x514   :  { %v1171_v47 = vsel %vm1166_vm1, %v1161_v43, %v1169_v44 }
 0x515   :  { %v1174_v48 = vpack.c.bf16 %v1171_v47, %v1170_v46 }
 0x517   :  { %1397 = vmatpush3.bf16.msra.mxu0 %v1174_v48 }
 0x51a   :  { %1399 = vmatmul.mubr.msk.bf16.vlgmr.msra.gmra.mxu0 %vm1175_vm2, %v1173_v49 }
 0x5da   :  { %v1213_v51 = vpop.f32.mrf.mxu0 }
 0x5db   :  { %vm1219_vm3 = vcmp.gt.f32.partialorder %v1213_v51, 0.0  ;;  %v1221_v52 = vmul.f32 %v1220_v50, %v1213_v51 }
 0x5dc   :  { %v1400_v53 = vpop.f32.mrf.mxu0 }
 0x5dd   :  { %v1222_v55 = vsel %vm1219_vm3, %v1213_v51, %v1221_v52 }
 0x5de   :  { %v1229_v56 = vmul.f32 %v1227_v54, %v1222_v55  ;;  %v1216_v57 = vpop.f32.mrf.mxu0 }
 0x5e0   :  { %v1230_v58 = vrot.slane %v1229_v56, 4  ;;  %v1401_v59 = vpop.f32.mrf.mxu0 }
 0x5e2   :  { %v1231_v60 = vadd.f32 %v1230_v58, %v1229_v56 }
 0x5e4   :  { %v1232_v61 = vrot.slane %v1231_v60, 2 }
 0x5e6   :  { %v1233_v62 = vadd.f32 %v1232_v61, %v1231_v60 }
 0x5e8   :  { %v1234_v7 = vrot.slane %v1233_v62, 1 }
 0x5ea   :  { %v1235_v1 = vadd.f32 %v1234_v7, %v1233_v62 }
 0x5ec   :  { %v1238_v3 = vadd.f32 %v1237_v63, %v1235_v1 }
 0x5ee   :  { %1239 = vst [vmem:[%s1951_s16] sm:$0x1] %v1238_v3 }
 0x5ef   :  { %1244 = vsyncpa [#allocation3], 1 }

</bundles_post_ra>
